<compile_context>
chip_gen: v7x
topology: tpu7x:2x2x1
jax: 0.10.0
libtpu: 0.0.40
codegen_flags: <defaults>
</compile_context>

<pallas_src>
import functools

import numpy as np
import jax
import jax.numpy as jnp
from jax.experimental import pallas as pl
from jax.experimental.pallas import tpu as pltpu


# ---------------------------------------------------------------------------
# Cody-Waite split of pi/2 (computed in float64 on the host).
#   HI has 14 significant bits, MID has 14 significant bits  ->  n*HI and
#   n*MID are exact in f32 for |n| <= 2^10 (|proj| up to ~1600, far beyond
#   anything a Gaussian projection produces).
# ---------------------------------------------------------------------------
_PIO2_D = float(np.pi) / 2.0
_PIO2_HI = float(np.round(_PIO2_D * 8192.0) / 8192.0)                       # 1.57080078125
_PIO2_MID = float(np.float32(np.round((_PIO2_D - _PIO2_HI) * 2.0**31) / 2.0**31))
_PIO2_LO = float(np.float32(_PIO2_D - _PIO2_HI - _PIO2_MID))
_TWO_OVER_PI = float(2.0 / np.pi)


def _sincos(a):
    """Fused sin/cos (f32): one shared range reduction, both polynomials."""
    n = jnp.round(a * _TWO_OVER_PI)
    r = a - n * _PIO2_HI
    r = r - n * _PIO2_MID
    r = r - n * _PIO2_LO
    q = n.astype(jnp.int32) & 3          # quadrant; two's-complement & handles n < 0
    r2 = r * r
    # |r| <= pi/4 polynomials (fdlibm single-precision kernels)
    ps = r + r * r2 * (-1.6666667163e-01 + r2 * (8.3333337680e-03
         + r2 * (-1.9841270114e-04 + r2 * 2.7557314297e-06)))
    pc = 1.0 + r2 * (-0.5 + r2 * (4.1666667908e-02
         + r2 * (-1.3888889225e-03 + r2 * 2.4801587642e-05)))
    swap = (q & 1) == 1                  # q in {1,3}: sin/cos swap roles
    sin_v = jnp.where(swap, pc, ps)
    cos_v = jnp.where(swap, ps, pc)
    sin_v = jnp.where(q >= 2, -sin_v, sin_v)                 # q in {2,3}
    cos_v = jnp.where((q == 1) | (q == 2), -cos_v, cos_v)    # q in {1,2}
    return sin_v, cos_v


@functools.lru_cache(maxsize=None)
def _build_call(n_pad, tm, cin, cout, out_dtype_name, natural_out):
    out_dtype = jnp.dtype(out_dtype_name)
    grid = (n_pad // tm,)

    def kernel(xT_ref, wT_ref, o_ref):
        xt = xT_ref[...].astype(jnp.float32)       # (Cin, TM)  batch on lanes
        w = wT_ref[...].astype(jnp.float32)        # (Cout, Cin)
        # Projection on the MXU (K=cin is tiny but off the critical path).
        acc = jnp.dot(w, xt, preferred_element_type=jnp.float32)   # (Cout, TM)
        sin_v, cos_v = _sincos(acc)                                # lane-dense VPU work
        out_t = jnp.concatenate([sin_v, cos_v], axis=0)            # (2*Cout, TM)
        if natural_out:
            # XLU transpose -> single contiguous natural-layout (TM, 2*Cout) store.
            o_ref[...] = out_t.T.astype(o_ref.dtype)
        else:
            o_ref[...] = out_t.astype(o_ref.dtype)

    if natural_out:
        out_shape = jax.ShapeDtypeStruct((n_pad, 2 * cout), out_dtype)
        out_spec = pl.BlockSpec((tm, 2 * cout), lambda i: (i, 0))
    else:
        out_shape = jax.ShapeDtypeStruct((2 * cout, n_pad), out_dtype)
        out_spec = pl.BlockSpec((2 * cout, tm), lambda i: (0, i))

    cost = pl.CostEstimate(
        flops=2 * n_pad * cin * cout          # MXU projection
              + 40 * n_pad * cout,            # fused sincos: VPU polynomial work
        transcendentals=0,                    # sin/cos lower to VPU sequences, not EUP
        bytes_accessed=4 * (n_pad * cin + cin * cout)
                       + out_dtype.itemsize * n_pad * 2 * cout,
    )

    return pl.pallas_call(
        kernel,
        out_shape=out_shape,
        grid_spec=pltpu.PrefetchScalarGridSpec(
            num_scalar_prefetch=0,
            grid=grid,
            in_specs=[
                pl.BlockSpec((cin, tm), lambda i: (0, i)),     # x^T tile
                pl.BlockSpec((cout, cin), lambda i: (0, 0)),   # weights (resident)
            ],
            out_specs=out_spec,
        ),
        compiler_params=pltpu.CompilerParams(
            dimension_semantics=("parallel",),   # independent batch tiles -> megacore
            vmem_limit_bytes=32 * 1024 * 1024,
        ),
        cost_estimate=cost,
    )


def _choose_tm(n, cin, cout, requested):
    """Batch tile: multiple of 128 (lane axis), VMEM-capped, >=2 tiles if possible."""
    n_lane = ((n + 127) // 128) * 128
    # double-buffered in/out blocks + ~10 live f32 temporaries per (row, cout)
    per_row = 4 * 2 * cin + 4 * 2 * (2 * cout) + 4 * 10 * cout
    cap = max(128, (24 * 1024 * 1024) // per_row)
    tm = max(128, (min(int(requested), n_lane, cap) // 128) * 128)
    # v7x has 2 TensorCores: make sure the "parallel" grid has >= 2 tiles.
    while tm > 128 and -(-n // tm) < 2:
        tm = max(128, ((tm // 2) // 128) * 128)
    return tm


_NATURAL_OUT_OK = True   # flipped off once if the in-kernel transpose fails to lower


def gaussian_embedding(x, fourier_mapping, *, tm=2048, out_dtype=None):
    """x: (N, Cin) f32; fourier_mapping: (Cin, Cout) f32 -> (N, 2*Cout)."""
    global _NATURAL_OUT_OK
    n, cin = x.shape
    cin_w, cout = fourier_mapping.shape
    assert cin == cin_w
    assert cout % 8 == 0, "cout must be a multiple of 8 (aligned sublane slabs)"
    out_dtype = jnp.dtype(out_dtype or x.dtype)

    tm = _choose_tm(n, cin, cout, tm)
    n_pad = -(-n // tm) * tm

    # x is only cin*4 B/row; pad+transpose here is cheap layout plumbing that keeps
    # the in-kernel matmul in standard (M,K)x(K,N) MXU form.
    x_t = jnp.pad(x, ((0, n_pad - n), (0, 0))).T        # (Cin, Npad)
    w_t = fourier_mapping.T                             # (Cout, Cin)

    if _NATURAL_OUT_OK:
        try:
            call = _build_call(n_pad, tm, cin, cout, out_dtype.name, True)
            return call(x_t, w_t)[:n]                   # natural layout, no transpose
        except Exception:
            _NATURAL_OUT_OK = False                     # fall back once, keep running
    # Fallback: transposed output + wrapper transpose (extra HBM pass, always lowers).
    call = _build_call(n_pad, tm, cin, cout, out_dtype.name, False)
    return call(x_t, w_t).T[:n]


if __name__ == "__main__":
    # Module hyperparameters (small, consistent with the forward pass).
    in_channels = 4
    out_channels = 32
    scale = 1.0
    batch = 300  # not a tile multiple: exercises padding + multi-tile grid

    # Deterministic parameter init, mirroring the PyTorch __init__.
    np.random.seed(10)
    fourier_mapping_np = np.random.normal(0, scale, (in_channels, out_channels))
    fourier_mapping = jnp.asarray(fourier_mapping_np, dtype=jnp.float32)

    # Deterministic example input.
    key = jax.random.PRNGKey(0)
    x = jax.random.normal(key, (batch, in_channels), dtype=jnp.float32)

    out = jax.block_until_ready(gaussian_embedding(x, fourier_mapping))

    # Sanity check against a pure-JAX reference of the PyTorch forward.
    proj_ref = x @ fourier_mapping
    ref = jnp.concatenate([jnp.sin(proj_ref), jnp.cos(proj_ref)], axis=-1)
    assert out.shape == (batch, 2 * out_channels)
    np.testing.assert_allclose(np.asarray(out), np.asarray(ref), rtol=1e-5, atol=1e-5)

    print("KERNEL_OK")
</pallas_src>

<mosaic_0001>
module attributes {stable_mosaic.version = 11 : i64} {
  func.func @kernel(%arg0: i32, %arg1: memref<4x128xf32, #tpu.memory_space<vmem>>, %arg2: memref<32x4xf32, #tpu.memory_space<vmem>>, %arg3: memref<128x64xf32, #tpu.memory_space<vmem>>) attributes {dimension_semantics = [#tpu.dimension_semantics<parallel>], iteration_bounds = array<i64: 3>, scalar_prefetch = 0 : i64, scratch_operands = 0 : i64, tpu.core_type = #tpu.core_type<tc>, window_params = [{transform_indices = @transform_0, window_bounds = array<i64: 4, 128>}, {pipeline_mode = #tpu.pipeline_mode<synchronous>, transform_indices = @transform_1, window_bounds = array<i64: 32, 4>}, {transform_indices = @transform_2, window_bounds = array<i64: 128, 64>}]} {
    %c0 = arith.constant 0 : index
    %c0_0 = arith.constant 0 : index
    %0 = vector.load %arg1[%c0, %c0_0] : memref<4x128xf32, #tpu.memory_space<vmem>>, vector<4x128xf32>
    %c0_1 = arith.constant 0 : index
    %c0_2 = arith.constant 0 : index
    %1 = vector.load %arg2[%c0_1, %c0_2] : memref<32x4xf32, #tpu.memory_space<vmem>>, vector<32x4xf32>
    %cst = arith.constant dense<0.000000e+00> : vector<32x128xf32>
    %2 = tpu.matmul %1, %0, %cst {dimension_numbers = #tpu.dot_dimension_numbers<[1], [0], [0], [1], [0, 0, 1, 1], [], []>} : vector<32x4xf32>, vector<4x128xf32>, vector<32x128xf32> -> vector<32x128xf32>
    %cst_3 = arith.constant 0.636619746 : f32
    %3 = vector.broadcast %cst_3 : f32 to vector<32x128xf32>
    %4 = arith.mulf %2, %3 : vector<32x128xf32>
    %5 = math.roundeven %4 : vector<32x128xf32>
    %cst_4 = arith.constant 1.57080078 : f32
    %6 = vector.broadcast %cst_4 : f32 to vector<32x128xf32>
    %7 = arith.mulf %5, %6 : vector<32x128xf32>
    %8 = arith.subf %2, %7 : vector<32x128xf32>
    %cst_5 = arith.constant -4.45451587E-6 : f32
    %9 = vector.broadcast %cst_5 : f32 to vector<32x128xf32>
    %10 = arith.mulf %5, %9 : vector<32x128xf32>
    %11 = arith.subf %8, %10 : vector<32x128xf32>
    %cst_6 = arith.constant 6.07709438E-11 : f32
    %12 = vector.broadcast %cst_6 : f32 to vector<32x128xf32>
    %13 = arith.mulf %5, %12 : vector<32x128xf32>
    %14 = arith.subf %11, %13 : vector<32x128xf32>
    %15 = arith.fptosi %5 : vector<32x128xf32> to vector<32x128xi32>
    %c3_i32 = arith.constant 3 : i32
    %16 = vector.broadcast %c3_i32 : i32 to vector<32x128xi32>
    %17 = arith.andi %15, %16 : vector<32x128xi32>
    %18 = arith.mulf %14, %14 : vector<32x128xf32>
    %19 = arith.mulf %14, %18 : vector<32x128xf32>
    %cst_7 = arith.constant 2.75573143E-6 : f32
    %20 = vector.broadcast %cst_7 : f32 to vector<32x128xf32>
    %21 = arith.mulf %18, %20 : vector<32x128xf32>
    %cst_8 = arith.constant -1.98412701E-4 : f32
    %22 = vector.broadcast %cst_8 : f32 to vector<32x128xf32>
    %23 = arith.addf %22, %21 : vector<32x128xf32>
    %24 = arith.mulf %18, %23 : vector<32x128xf32>
    %cst_9 = arith.constant 0.00833333377 : f32
    %25 = vector.broadcast %cst_9 : f32 to vector<32x128xf32>
    %26 = arith.addf %25, %24 : vector<32x128xf32>
    %27 = arith.mulf %18, %26 : vector<32x128xf32>
    %cst_10 = arith.constant -0.166666672 : f32
    %28 = vector.broadcast %cst_10 : f32 to vector<32x128xf32>
    %29 = arith.addf %28, %27 : vector<32x128xf32>
    %30 = arith.mulf %19, %29 : vector<32x128xf32>
    %31 = arith.addf %14, %30 : vector<32x128xf32>
    %cst_11 = arith.constant 2.48015876E-5 : f32
    %32 = vector.broadcast %cst_11 : f32 to vector<32x128xf32>
    %33 = arith.mulf %18, %32 : vector<32x128xf32>
    %cst_12 = arith.constant -0.00138888892 : f32
    %34 = vector.broadcast %cst_12 : f32 to vector<32x128xf32>
    %35 = arith.addf %34, %33 : vector<32x128xf32>
    %36 = arith.mulf %18, %35 : vector<32x128xf32>
    %cst_13 = arith.constant 0.0416666679 : f32
    %37 = vector.broadcast %cst_13 : f32 to vector<32x128xf32>
    %38 = arith.addf %37, %36 : vector<32x128xf32>
    %39 = arith.mulf %18, %38 : vector<32x128xf32>
    %cst_14 = arith.constant -5.000000e-01 : f32
    %40 = vector.broadcast %cst_14 : f32 to vector<32x128xf32>
    %41 = arith.addf %40, %39 : vector<32x128xf32>
    %42 = arith.mulf %18, %41 : vector<32x128xf32>
    %cst_15 = arith.constant 1.000000e+00 : f32
    %43 = vector.broadcast %cst_15 : f32 to vector<32x128xf32>
    %44 = arith.addf %43, %42 : vector<32x128xf32>
    %c1_i32 = arith.constant 1 : i32
    %45 = vector.broadcast %c1_i32 : i32 to vector<32x128xi32>
    %46 = arith.andi %17, %45 : vector<32x128xi32>
    %c1_i32_16 = arith.constant 1 : i32
    %47 = vector.broadcast %c1_i32_16 : i32 to vector<32x128xi32>
    %48 = arith.cmpi eq, %46, %47 : vector<32x128xi32>
    %49 = arith.select %48, %44, %31 : vector<32x128xi1>, vector<32x128xf32>
    %50 = arith.select %48, %31, %44 : vector<32x128xi1>, vector<32x128xf32>
    %c2_i32 = arith.constant 2 : i32
    %51 = vector.broadcast %c2_i32 : i32 to vector<32x128xi32>
    %52 = arith.cmpi sge, %17, %51 : vector<32x128xi32>
    %cst_17 = arith.constant 0.000000e+00 : f32
    %53 = vector.broadcast %cst_17 : f32 to vector<32x128xf32>
    %54 = arith.subf %53, %49 : vector<32x128xf32>
    %55 = arith.select %52, %54, %49 : vector<32x128xi1>, vector<32x128xf32>
    %c1_i32_18 = arith.constant 1 : i32
    %56 = vector.broadcast %c1_i32_18 : i32 to vector<32x128xi32>
    %57 = arith.cmpi eq, %17, %56 : vector<32x128xi32>
    %c2_i32_19 = arith.constant 2 : i32
    %58 = vector.broadcast %c2_i32_19 : i32 to vector<32x128xi32>
    %59 = arith.cmpi eq, %17, %58 : vector<32x128xi32>
    %60 = arith.ori %57, %59 : vector<32x128xi1>
    %cst_20 = arith.constant 0.000000e+00 : f32
    %61 = vector.broadcast %cst_20 : f32 to vector<32x128xf32>
    %62 = arith.subf %61, %50 : vector<32x128xf32>
    %63 = arith.select %60, %62, %50 : vector<32x128xi1>, vector<32x128xf32>
    %64 = tpu.concatenate %55, %63 in 0 : vector<32x128xf32>, vector<32x128xf32> -> vector<64x128xf32>
    %65 = tpu.transpose %64, [1, 0] : vector<64x128xf32> -> vector<128x64xf32>
    %c0_21 = arith.constant 0 : index
    %c0_22 = arith.constant 0 : index
    %66 = vector.load %arg3[%c0_21, %c0_22] : memref<128x64xf32, #tpu.memory_space<vmem>>, vector<128x64xf32>
    tpu.vector_store %arg3[%c0_21, %c0_22], %65 {strides = array<i32>} : memref<128x64xf32, #tpu.memory_space<vmem>>, vector<128x64xf32>,
    return
  }
  func.func @transform_0(%arg0: i32) -> (i32, i32) {
    %c0_i32 = arith.constant 0 : i32
    %c0_i32_0 = arith.constant 0 : i32
    return %c0_i32, %arg0 : i32, i32
  }
  func.func @transform_1(%arg0: i32) -> (i32, i32) {
    %c0_i32 = arith.constant 0 : i32
    %c0_i32_0 = arith.constant 0 : i32
    %c0_i32_1 = arith.constant 0 : i32
    return %c0_i32, %c0_i32_0 : i32, i32
  }
  func.func @transform_2(%arg0: i32) -> (i32, i32) {
    %c0_i32 = arith.constant 0 : i32
    %c0_i32_0 = arith.constant 0 : i32
    return %arg0, %c0_i32 : i32, i32
  }
}

module attributes {stable_mosaic.version = 11 : i64} {
  func.func @kernel(%arg0: i32, %arg1: memref<4x128xf32, #tpu.memory_space<vmem>>, %arg2: memref<32x4xf32, #tpu.memory_space<vmem>>, %arg3: memref<64x128xf32, #tpu.memory_space<vmem>>) attributes {dimension_semantics = [#tpu.dimension_semantics<parallel>], iteration_bounds = array<i64: 3>, scalar_prefetch = 0 : i64, scratch_operands = 0 : i64, tpu.core_type = #tpu.core_type<tc>, window_params = [{transform_indices = @transform_0, window_bounds = array<i64: 4, 128>}, {pipeline_mode = #tpu.pipeline_mode<synchronous>, transform_indices = @transform_1, window_bounds = array<i64: 32, 4>}, {transform_indices = @transform_2, window_bounds = array<i64: 64, 128>}]} {
    %c0 = arith.constant 0 : index
    %c0_0 = arith.constant 0 : index
    %0 = vector.load %arg1[%c0, %c0_0] : memref<4x128xf32, #tpu.memory_space<vmem>>, vector<4x128xf32>
    %c0_1 = arith.constant 0 : index
    %c0_2 = arith.constant 0 : index
    %1 = vector.load %arg2[%c0_1, %c0_2] : memref<32x4xf32, #tpu.memory_space<vmem>>, vector<32x4xf32>
    %cst = arith.constant dense<0.000000e+00> : vector<32x128xf32>
    %2 = tpu.matmul %1, %0, %cst {dimension_numbers = #tpu.dot_dimension_numbers<[1], [0], [0], [1], [0, 0, 1, 1], [], []>} : vector<32x4xf32>, vector<4x128xf32>, vector<32x128xf32> -> vector<32x128xf32>
    %cst_3 = arith.constant 0.636619746 : f32
    %3 = vector.broadcast %cst_3 : f32 to vector<32x128xf32>
    %4 = arith.mulf %2, %3 : vector<32x128xf32>
    %5 = math.roundeven %4 : vector<32x128xf32>
    %cst_4 = arith.constant 1.57080078 : f32
    %6 = vector.broadcast %cst_4 : f32 to vector<32x128xf32>
    %7 = arith.mulf %5, %6 : vector<32x128xf32>
    %8 = arith.subf %2, %7 : vector<32x128xf32>
    %cst_5 = arith.constant -4.45451587E-6 : f32
    %9 = vector.broadcast %cst_5 : f32 to vector<32x128xf32>
    %10 = arith.mulf %5, %9 : vector<32x128xf32>
    %11 = arith.subf %8, %10 : vector<32x128xf32>
    %cst_6 = arith.constant 6.07709438E-11 : f32
    %12 = vector.broadcast %cst_6 : f32 to vector<32x128xf32>
    %13 = arith.mulf %5, %12 : vector<32x128xf32>
    %14 = arith.subf %11, %13 : vector<32x128xf32>
    %15 = arith.fptosi %5 : vector<32x128xf32> to vector<32x128xi32>
    %c3_i32 = arith.constant 3 : i32
    %16 = vector.broadcast %c3_i32 : i32 to vector<32x128xi32>
    %17 = arith.andi %15, %16 : vector<32x128xi32>
    %18 = arith.mulf %14, %14 : vector<32x128xf32>
    %19 = arith.mulf %14, %18 : vector<32x128xf32>
    %cst_7 = arith.constant 2.75573143E-6 : f32
    %20 = vector.broadcast %cst_7 : f32 to vector<32x128xf32>
    %21 = arith.mulf %18, %20 : vector<32x128xf32>
    %cst_8 = arith.constant -1.98412701E-4 : f32
    %22 = vector.broadcast %cst_8 : f32 to vector<32x128xf32>
    %23 = arith.addf %22, %21 : vector<32x128xf32>
    %24 = arith.mulf %18, %23 : vector<32x128xf32>
    %cst_9 = arith.constant 0.00833333377 : f32
    %25 = vector.broadcast %cst_9 : f32 to vector<32x128xf32>
    %26 = arith.addf %25, %24 : vector<32x128xf32>
    %27 = arith.mulf %18, %26 : vector<32x128xf32>
    %cst_10 = arith.constant -0.166666672 : f32
    %28 = vector.broadcast %cst_10 : f32 to vector<32x128xf32>
    %29 = arith.addf %28, %27 : vector<32x128xf32>
    %30 = arith.mulf %19, %29 : vector<32x128xf32>
    %31 = arith.addf %14, %30 : vector<32x128xf32>
    %cst_11 = arith.constant 2.48015876E-5 : f32
    %32 = vector.broadcast %cst_11 : f32 to vector<32x128xf32>
    %33 = arith.mulf %18, %32 : vector<32x128xf32>
    %cst_12 = arith.constant -0.00138888892 : f32
    %34 = vector.broadcast %cst_12 : f32 to vector<32x128xf32>
    %35 = arith.addf %34, %33 : vector<32x128xf32>
    %36 = arith.mulf %18, %35 : vector<32x128xf32>
    %cst_13 = arith.constant 0.0416666679 : f32
    %37 = vector.broadcast %cst_13 : f32 to vector<32x128xf32>
    %38 = arith.addf %37, %36 : vector<32x128xf32>
    %39 = arith.mulf %18, %38 : vector<32x128xf32>
    %cst_14 = arith.constant -5.000000e-01 : f32
    %40 = vector.broadcast %cst_14 : f32 to vector<32x128xf32>
    %41 = arith.addf %40, %39 : vector<32x128xf32>
    %42 = arith.mulf %18, %41 : vector<32x128xf32>
    %cst_15 = arith.constant 1.000000e+00 : f32
    %43 = vector.broadcast %cst_15 : f32 to vector<32x128xf32>
    %44 = arith.addf %43, %42 : vector<32x128xf32>
    %c1_i32 = arith.constant 1 : i32
    %45 = vector.broadcast %c1_i32 : i32 to vector<32x128xi32>
    %46 = arith.andi %17, %45 : vector<32x128xi32>
    %c1_i32_16 = arith.constant 1 : i32
    %47 = vector.broadcast %c1_i32_16 : i32 to vector<32x128xi32>
    %48 = arith.cmpi eq, %46, %47 : vector<32x128xi32>
    %49 = arith.select %48, %44, %31 : vector<32x128xi1>, vector<32x128xf32>
    %50 = arith.select %48, %31, %44 : vector<32x128xi1>, vector<32x128xf32>
    %c2_i32 = arith.constant 2 : i32
    %51 = vector.broadcast %c2_i32 : i32 to vector<32x128xi32>
    %52 = arith.cmpi sge, %17, %51 : vector<32x128xi32>
    %cst_17 = arith.constant 0.000000e+00 : f32
    %53 = vector.broadcast %cst_17 : f32 to vector<32x128xf32>
    %54 = arith.subf %53, %49 : vector<32x128xf32>
    %55 = arith.select %52, %54, %49 : vector<32x128xi1>, vector<32x128xf32>
    %c1_i32_18 = arith.constant 1 : i32
    %56 = vector.broadcast %c1_i32_18 : i32 to vector<32x128xi32>
    %57 = arith.cmpi eq, %17, %56 : vector<32x128xi32>
    %c2_i32_19 = arith.constant 2 : i32
    %58 = vector.broadcast %c2_i32_19 : i32 to vector<32x128xi32>
    %59 = arith.cmpi eq, %17, %58 : vector<32x128xi32>
    %60 = arith.ori %57, %59 : vector<32x128xi1>
    %cst_20 = arith.constant 0.000000e+00 : f32
    %61 = vector.broadcast %cst_20 : f32 to vector<32x128xf32>
    %62 = arith.subf %61, %50 : vector<32x128xf32>
    %63 = arith.select %60, %62, %50 : vector<32x128xi1>, vector<32x128xf32>
    %64 = tpu.concatenate %55, %63 in 0 : vector<32x128xf32>, vector<32x128xf32> -> vector<64x128xf32>
    %c0_21 = arith.constant 0 : index
    %c0_22 = arith.constant 0 : index
    %65 = vector.load %arg3[%c0_21, %c0_22] : memref<64x128xf32, #tpu.memory_space<vmem>>, vector<64x128xf32>
    tpu.vector_store %arg3[%c0_21, %c0_22], %64 {strides = array<i32>} : memref<64x128xf32, #tpu.memory_space<vmem>>, vector<64x128xf32>,
    return
  }
  func.func @transform_0(%arg0: i32) -> (i32, i32) {
    %c0_i32 = arith.constant 0 : i32
    %c0_i32_0 = arith.constant 0 : i32
    return %c0_i32, %arg0 : i32, i32
  }
  func.func @transform_1(%arg0: i32) -> (i32, i32) {
    %c0_i32 = arith.constant 0 : i32
    %c0_i32_0 = arith.constant 0 : i32
    %c0_i32_1 = arith.constant 0 : i32
    return %c0_i32, %c0_i32_0 : i32, i32
  }
  func.func @transform_2(%arg0: i32) -> (i32, i32) {
    %c0_i32 = arith.constant 0 : i32
    %c0_i32_0 = arith.constant 0 : i32
    return %c0_i32, %arg0 : i32, i32
  }
}

</mosaic_0001>

<bundles_post_ra>
// kernel: tpu_custom_call.1
= control target key start
LH: loop header
LB: loop body
LE: loop exit
PB: predicated region body
PF: predicated region fallthrough
CT: control target
= control target key end

     0   :  { %s592_s9 = smov 0   ;;  %s758_s0 = inlined_call_operand.vmem [shape: f32[4,384], index: 0, kind: input, shape index: {}]   ;;  %s759_s1 = inlined_call_operand.vmem [shape: f32[32,4], index: 1, kind: input, shape index: {}]   ;;  %s760_s2 = inlined_call_operand.vmem [shape: f32[384,64], index: 2, kind: output, shape index: {}]  }
   0x1 LB: > { %s598_s10 = sadd.s32 4294967295, %s575_s9   ;;  %p518_p0 = scmp.ge.s32.totalorder %s575_s9, 1  ;;  %s575_s9 = sphi %s592_s9, %s12_s9  }
   0x2   : > { %p111_p1 = scmp.lt.s32.totalorder %s575_s9, 4 }
   0x4   : > { %p112_p2 = pnand %p518_p0, %p111_p1 }
   0x5   : > { %p132_p3 = scmp.lt.s32.totalorder (!%p112_p2), %s598_s10, 2  ;;  %v143_v0 = vld [vmem:[%s759_s1] sm:$0xff] (!%p112_p2)  ;;  %vm147_vm0 = vcmask (!%p112_p2), 31744   ;;  %v145_v1 = vld [vmem:[%s759_s1 + $0x10] sm:$0xff] (!%p112_p2)  ;;  %vm160_vm1 = vcmask (!%p112_p2), 1043456   ;;  %v144_v3 = vld [vmem:[%s759_s1 + $0x8] sm:$0xff] (!%p112_p2) }
   0x6   : > { %115 = sbr.rel (%p112_p2) target bundleno = 457 (0x1c9), region = 28  ;;  %536 = vmatprep.mubr.msk.f32.mxu0 (!%p112_p2), %vm147_vm0, %v143_v0  ;;  %539 = vmatprep.mubr.msk.f32.mxu1 (!%p112_p2), %vm147_vm0, %v145_v1  ;;  %v146_v4 = vld [vmem:[%s759_s1 + $0x18] sm:$0xff] (!%p112_p2)  ;;  %s520_s24 = sshll.u32 (!%p112_p2), %s598_s10, 4 }
   0x7   : > { %p137_p4 = scmp.lt.s32.totalorder (!%p112_p2), %s520_s24, 47 }
   0xd   : > { %s133_s15 = scalar_select %p132_p3, %s598_s10, 2 }
   0xe   : > { %s770_s24 = smov (!%p137_p4, %s520_s24), 47 }
   0xf   : > { %s519_s16 = sshll.u32 %s133_s15, 2  ;;  %s521_s25 = sshll.u32 %s770_s24, 3 }
  0x10   : > { %s135_s19 = scalar_lea.vmem %s758_s0, %s519_s16  ;;  %s721_s28 = scalar_lea.vmem %s760_s2, %s521_s25 }
  0x11   : > { %v142_v2 = vld [vmem:[%s135_s19] sm:$0xf] }
  0x12   : > { %534 = vmatprep.subr.msk.mxu0 %vm160_vm1, %v142_v2  ;;  %542 = vmatprep.subr.msk.mxu1 %vm160_vm1, %v142_v2 }
  0x13   : > { %535 = vmatpush3.msk.msra.mxu0 %vm160_vm1, %v142_v2  ;;  %543 = vmatpush3.msk.msra.mxu1 %vm160_vm1, %v142_v2 }
  0x14   : > { %537 = vmatmul.mubr.msk.f32.vlgmr.msra.gmra.mrb[0].mxu0 %vm147_vm0, %v144_v3  ;;  %540 = vmatmul.mubr.msk.f32.vlgmr.msra.gmra.mrb[0].mxu1 %vm147_vm0, %v146_v4 }
  0xe7   : > { %v538_v5 = vpop.f32.mrb[0].mxu0  ;;  %v541_v6 = vpop.f32.mrb[0].mxu1 }
  0xe8   : > { %v250_v7 = vmul.f32 0.63661975, %v538_v5  ;;  %v623_v8 = vmul.f32 0.63661975, %v541_v6  ;;  %v230_v9 = vpop.f32.mrb[1].mxu0  ;;  %v240_v10 = vpop.f32.mrb[1].mxu1 }
  0xe9   : > { %v249_v11 = vmul.f32 0.63661975, %v230_v9  ;;  %v251_v12 = vmul.f32 0.63661975, %v240_v10 }
  0xea   : > { %v545_v13 = vround.rtne.f32 %v250_v7  ;;  %v547_v14 = vround.rtne.f32 %v623_v8  ;;  %v553_v18 = vcvt.f32.s32 %v250_v7  ;;  %v559_v45 = vcvt.f32.s32 %v623_v8 }
  0xeb   : > { %v544_v15 = vround.rtne.f32 %v249_v11  ;;  %v546_v16 = vround.rtne.f32 %v251_v12  ;;  %v550_v21 = vcvt.f32.s32 %v249_v11  ;;  %v556_v25 = vcvt.f32.s32 %v251_v12 }
  0xec   : > { %v258_v17 = vmul.f32 1.5708008, %v545_v13  ;;  %v260_v19 = vmul.f32 1.5708008, %v547_v14  ;;  %v268_v20 = vmul.f32 -4.454516e-06, %v547_v14  ;;  %v266_v23 = vmul.f32 -4.454516e-06, %v545_v13 }
  0xed   : > { %v257_v24 = vmul.f32 1.5708008, %v544_v15  ;;  %v276_v27 = vmul.f32 6.0770944e-11, %v547_v14  ;;  %v259_v28 = vmul.f32 1.5708008, %v546_v16  ;;  %v267_v29 = vmul.f32 -4.454516e-06, %v546_v16 }
  0xee   : > { %v262_v22 = vsub.f32 %v538_v5, %v258_v17  ;;  %v264_v26 = vsub.f32 %v541_v6, %v260_v19  ;;  %v274_v31 = vmul.f32 6.0770944e-11, %v545_v13  ;;  %v265_v33 = vmul.f32 -4.454516e-06, %v544_v15 }
  0xef   : > { %v261_v32 = vsub.f32 %v230_v9, %v257_v24  ;;  %v626_v35 = vand.u32 3, %v550_v21  ;;  %v263_v36 = vsub.f32 %v240_v10, %v259_v28  ;;  %v275_v37 = vmul.f32 6.0770944e-11, %v546_v16 }
  0xf0   : > { %v270_v30 = vsub.f32 %v262_v22, %v266_v23  ;;  %v272_v34 = vsub.f32 %v264_v26, %v268_v20  ;;  %v630_v39 = vand.u32 3, %v553_v18  ;;  %v273_v41 = vmul.f32 6.0770944e-11, %v544_v15 }
  0xf1   : > { %v269_v40 = vsub.f32 %v261_v32, %v265_v33  ;;  %v271_v43 = vsub.f32 %v263_v36, %v267_v29  ;;  %v645_v49 = vand.u32 3, %v556_v25  ;;  %v361_v50 = vand.u32 1, %v626_v35 }
  0xf2   : > { %v628_v38 = vsub.f32 %v270_v30, %v274_v31  ;;  %v632_v42 = vsub.f32 %v272_v34, %v276_v27  ;;  %v362_v54 = vand.u32 1, %v630_v39  ;;  %vm377_vm4 = vcmp.ge.s32.totalorder %v626_v35, 2 }
  0xf3   : > { %v637_v46 = vsub.f32 %v269_v40, %v273_v41  ;;  %v643_v48 = vsub.f32 %v271_v43, %v275_v37  ;;  %vm670_vm2 = vcmp.eq.s32.totalorder %v361_v50, 1  ;;  %vm378_vm6 = vcmp.ge.s32.totalorder %v630_v39, 2 }
  0xf4   : > { %v290_v44 = vmul.f32 %v628_v38, %v628_v38  ;;  %v641_v47 = vmul.f32 %v632_v42, %v632_v42  ;;  %vm676_vm3 = vcmp.eq.s32.totalorder %v362_v54, 1  ;;  %vm379_vm8 = vcmp.ge.s32.totalorder %v645_v49, 2 }
  0xf5   : > { %v289_v51 = vmul.f32 %v637_v46, %v637_v46  ;;  %v291_v56 = vmul.f32 %v643_v48, %v643_v48  ;;  %vm389_vm10 = vcmp.eq.s32.totalorder %v626_v35, 1  ;;  %vm393_vm11 = vcmp.eq.s32.totalorder %v626_v35, 2 }
  0xf6   : > { %v298_v52 = vmul.f32 2.7557314e-06, %v290_v44  ;;  %v330_v53 = vmul.f32 2.4801588e-05, %v290_v44  ;;  %v294_v55 = vmul.f32 %v290_v44, %v628_v38  ;;  %v300_v57 = vmul.f32 2.7557314e-06, %v641_v47  ;;  %vm397_vm12 = vmor %vm389_vm10, %vm393_vm11 }
  0xf7   : > { %v332_v58 = vmul.f32 2.4801588e-05, %v641_v47  ;;  %v293_v59 = vmul.f32 %v289_v51, %v637_v46  ;;  %v297_v60 = vmul.f32 2.7557314e-06, %v289_v51  ;;  %v329_v61 = vmul.f32 2.4801588e-05, %v289_v51 }
  0xf8   : > { %v302_v62 = vadd.f32 -0.0001984127, %v298_v52  ;;  %v295_v63 = vmul.f32 %v291_v56, %v643_v48  ;;  %v334_v0 = vadd.f32 -0.0013888889, %v330_v53  ;;  %v299_v1 = vmul.f32 2.7557314e-06, %v291_v56 }
  0xf9   : > { %v331_v2 = vmul.f32 2.4801588e-05, %v291_v56  ;;  %v301_v3 = vadd.f32 -0.0001984127, %v297_v60  ;;  %v333_v4 = vadd.f32 -0.0013888889, %v329_v61 }
  0xfa   : > { %v306_v5 = vmul.f32 %v302_v62, %v290_v44  ;;  %v304_v6 = vadd.f32 -0.0001984127, %v300_v57  ;;  %v338_v7 = vmul.f32 %v334_v0, %v290_v44  ;;  %v303_v9 = vadd.f32 -0.0001984127, %v299_v1 }
  0xfb   : > { %v335_v10 = vadd.f32 -0.0013888889, %v331_v2  ;;  %v336_v11 = vadd.f32 -0.0013888889, %v332_v58  ;;  %v305_v12 = vmul.f32 %v301_v3, %v289_v51  ;;  %v337_v13 = vmul.f32 %v333_v4, %v289_v51 }
  0xfc   : > { %v310_v14 = vadd.f32 0.008333334, %v306_v5  ;;  %v308_v15 = vmul.f32 %v304_v6, %v641_v47  ;;  %v342_v16 = vadd.f32 0.041666668, %v338_v7  ;;  %v307_v17 = vmul.f32 %v303_v9, %v291_v56 }
  0xfd   : > { %v339_v18 = vmul.f32 %v335_v10, %v291_v56  ;;  %v340_v19 = vmul.f32 %v336_v11, %v641_v47  ;;  %v309_v20 = vadd.f32 0.008333334, %v305_v12  ;;  %v341_v21 = vadd.f32 0.041666668, %v337_v13 }
  0xfe   : > { %v314_v22 = vmul.f32 %v310_v14, %v290_v44  ;;  %v312_v23 = vadd.f32 0.008333334, %v308_v15  ;;  %v346_v24 = vmul.f32 %v342_v16, %v290_v44  ;;  %v311_v25 = vadd.f32 0.008333334, %v307_v17 }
  0xff   : > { %v343_v26 = vadd.f32 0.041666668, %v339_v18  ;;  %v344_v27 = vadd.f32 0.041666668, %v340_v19  ;;  %v313_v28 = vmul.f32 %v309_v20, %v289_v51  ;;  %v345_v29 = vmul.f32 %v341_v21, %v289_v51 }
 0x100   : > { %v318_v30 = vadd.f32 -0.16666667, %v314_v22  ;;  %v316_v31 = vmul.f32 %v312_v23, %v641_v47  ;;  %v350_v32 = vadd.f32 -0.5, %v346_v24  ;;  %v315_v33 = vmul.f32 %v311_v25, %v291_v56 }
 0x101   : > { %v347_v34 = vmul.f32 %v343_v26, %v291_v56  ;;  %v348_v36 = vmul.f32 %v344_v27, %v641_v47  ;;  %v317_v37 = vadd.f32 -0.16666667, %v313_v28  ;;  %v349_v40 = vadd.f32 -0.5, %v345_v29 }
 0x102   : > { %v322_v41 = vmul.f32 %v318_v30, %v294_v55  ;;  %v320_v43 = vadd.f32 -0.16666667, %v316_v31  ;;  %v354_v52 = vmul.f32 %v350_v32, %v290_v44  ;;  %v319_v53 = vadd.f32 -0.16666667, %v315_v33 }
 0x103   : > { %v351_v57 = vadd.f32 -0.5, %v347_v34  ;;  %v352_v58 = vadd.f32 -0.5, %v348_v36  ;;  %v321_v60 = vmul.f32 %v317_v37, %v293_v59  ;;  %v353_v61 = vmul.f32 %v349_v40, %v289_v51 }
 0x104   : > { %v326_v62 = vadd.f32 %v322_v41, %v628_v38  ;;  %v296_v0 = vmul.f32 %v641_v47, %v632_v42  ;;  %v358_v1 = vadd.f32 1.0, %v354_v52  ;;  %v323_v2 = vmul.f32 %v319_v53, %v295_v63 }
 0x105   : > { %v355_v3 = vmul.f32 %v351_v57, %v291_v56  ;;  %v288_v4 = vand.u32 3, %v559_v45  ;;  %v325_v55 = vadd.f32 %v321_v60, %v637_v46  ;;  %v357_v5 = vadd.f32 1.0, %v353_v61 }
 0x106   : > { %v363_v51 = vand.u32 1, %v645_v49  ;;  %v324_v56 = vmul.f32 %v320_v43, %v296_v0  ;;  %v356_v8 = vmul.f32 %v352_v58, %v641_v47  ;;  %v370_v46 = vsel %vm676_vm3, %v358_v1, %v326_v62 }
 0x107   : > { %v369_v45 = vsel %vm670_vm2, %v357_v5, %v325_v55  ;;  %v327_v50 = vadd.f32 %v323_v2, %v643_v48  ;;  %v359_v59 = vadd.f32 1.0, %v355_v3  ;;  %v382_v6 = vsub.f32 0.0, %v370_v46 }
 0x108   : > { %v381_v63 = vsub.f32 0.0, %v369_v45  ;;  %vm688_vm5 = vcmp.eq.s32.totalorder %v363_v51, 1  ;;  %v364_v9 = vand.u32 1, %v288_v4  ;;  %v328_v10 = vadd.f32 %v324_v56, %v632_v42 }
 0x109   : > { %v371_v47 = vsel %vm688_vm5, %v359_v59, %v327_v50  ;;  %v360_v11 = vadd.f32 1.0, %v356_v8  ;;  %v386_v48 = vsel %vm378_vm6, %v382_v6, %v370_v46  ;;  %v373_v42 = vsel %vm670_vm2, %v325_v55, %v357_v5 }
 0x10a   : > { %v385_v54 = vsel %vm377_vm4, %v381_v63, %v369_v45  ;;  %v383_v12 = vsub.f32 0.0, %v371_v47  ;;  %vm696_vm7 = vcmp.eq.s32.totalorder %v364_v9, 1  ;;  %vm380_vm9 = vcmp.ge.s32.totalorder %v288_v4, 2 }
 0x10b   : > { %409 = vxpose.xlu0.b32.start [1/8] (short) %v385_v54, 128  ;;  %v372_v14 = vsel %vm696_vm7, %v360_v11, %v328_v10  ;;  %v401_v18 = vsub.f32 0.0, %v373_v42  ;;  %v374_v19 = vsel %vm676_vm3, %v326_v62, %v358_v1  ;;  %vm390_vm13 = vcmp.eq.s32.totalorder %v630_v39, 1 }
 0x10c   : > { %v387_v15 = vsel %vm379_vm8, %v383_v12, %v371_v47  ;;  %v384_v16 = vsub.f32 0.0, %v372_v14  ;;  %vm394_vm14 = vcmp.eq.s32.totalorder %v630_v39, 2  ;;  %v402_v21 = vsub.f32 0.0, %v374_v19 }
 0x10d   : > { %v405_v20 = vsel %vm397_vm12, %v401_v18, %v373_v42  ;;  %v375_v22 = vsel %vm688_vm5, %v327_v50, %v359_v59  ;;  %vm398_vm15 = vmor %vm390_vm13, %vm394_vm14  ;;  %vm391_vm0 = vcmp.eq.s32.totalorder %v645_v49, 1  ;;  %vm395_vm1 = vcmp.eq.s32.totalorder %v645_v49, 2 }
 0x10e   : > { %v388_v17 = vsel %vm380_vm9, %v384_v16, %v372_v14  ;;  %v406_v23 = vsel %vm398_vm15, %v402_v21, %v374_v19  ;;  %v403_v35 = vsub.f32 0.0, %v375_v22  ;;  %v376_v24 = vsel %vm696_vm7, %v328_v10, %v360_v11  ;;  %vm399_vm2 = vmor %vm391_vm0, %vm395_vm1 }
 0x10f   : > { %410 = vxpose.xlu0.b32.cont [2/8] (short) %v386_v48, 128  ;;  %vm392_vm3 = vcmp.eq.s32.totalorder %v288_v4, 1  ;;  %vm396_vm4 = vcmp.eq.s32.totalorder %v288_v4, 2  ;;  %v404_v39 = vsub.f32 0.0, %v376_v24  ;;  %vm441_vm5 = vcmask 523264  }
 0x110   : > { %v407_v25 = vsel %vm399_vm2, %v403_v35, %v375_v22  ;;  %vm400_vm6 = vmor %vm392_vm3, %vm396_vm4 }
 0x111   : > { %v408_v26 = vsel %vm400_vm6, %v404_v39, %v376_v24 }
 0x113   : > { %411 = vxpose.xlu0.b32.cont [3/8] (short) %v387_v15, 128 }
 0x117   : > { %412 = vxpose.xlu0.b32.cont [4/8] (short) %v388_v17, 128 }
 0x11b   : > { %413 = vxpose.xlu0.b32.cont [5/8] (short) %v405_v20, 128 }
 0x11f   : > { %414 = vxpose.xlu0.b32.cont [6/8] (short) %v406_v23, 128 }
 0x123   : > { %415 = vxpose.xlu0.b32.cont [7/8] (short) %v407_v25, 128 }
 0x127   : > { %416 = vxpose.xlu0.b32.end [8/8] (short) %v408_v26, 128 }
 0x18b   : > { %v425_v49 = vpop.trf.xlu0 }
 0x18c   : > { %442 = vst.msk [vmem:[%s721_s28] sm:$0xff] %vm441_vm5, %v425_v49 }
 0x18f   : > { %v426_v27 = vpop.trf.xlu0 }
 0x190   : > { %443 = vst.msk [vmem:[%s721_s28 + $0x8] sm:$0xff] %vm441_vm5, %v426_v27 }
 0x193   : > { %v427_v28 = vpop.trf.xlu0 }
 0x194   : > { %444 = vst.msk [vmem:[%s721_s28 + $0x10] sm:$0xff] %vm441_vm5, %v427_v28 }
 0x197   : > { %v428_v29 = vpop.trf.xlu0 }
 0x198   : > { %445 = vst.msk [vmem:[%s721_s28 + $0x18] sm:$0xff] %vm441_vm5, %v428_v29 }
 0x19b   : > { %v429_v30 = vpop.trf.xlu0 }
 0x19c   : > { %446 = vst.msk [vmem:[%s721_s28 + $0x20] sm:$0xff] %vm441_vm5, %v429_v30 }
 0x19f   : > { %v430_v31 = vpop.trf.xlu0 }
 0x1a0   : > { %447 = vst.msk [vmem:[%s721_s28 + $0x28] sm:$0xff] %vm441_vm5, %v430_v31 }
 0x1a3   : > { %v431_v32 = vpop.trf.xlu0 }
 0x1a4   : > { %448 = vst.msk [vmem:[%s721_s28 + $0x30] sm:$0xff] %vm441_vm5, %v431_v32 }
 0x1a7   : > { %v432_v33 = vpop.trf.xlu0 }
 0x1a8   : > { %449 = vst.msk [vmem:[%s721_s28 + $0x38] sm:$0xff] %vm441_vm5, %v432_v33 }
 0x1ab   : > { %v433_v34 = vpop.trf.xlu0 }
 0x1ac   : > { %450 = vst.msk [vmem:[%s721_s28 + $0x40] sm:$0xff] %vm441_vm5, %v433_v34 }
 0x1af   : > { %v434_v36 = vpop.trf.xlu0 }
 0x1b0   : > { %451 = vst.msk [vmem:[%s721_s28 + $0x48] sm:$0xff] %vm441_vm5, %v434_v36 }
 0x1b3   : > { %v435_v37 = vpop.trf.xlu0 }
 0x1b4   : > { %452 = vst.msk [vmem:[%s721_s28 + $0x50] sm:$0xff] %vm441_vm5, %v435_v37 }
 0x1b7   : > { %v436_v40 = vpop.trf.xlu0 }
 0x1b8   : > { %453 = vst.msk [vmem:[%s721_s28 + $0x58] sm:$0xff] %vm441_vm5, %v436_v40 }
 0x1bb   : > { %v437_v41 = vpop.trf.xlu0 }
 0x1bc   : > { %454 = vst.msk [vmem:[%s721_s28 + $0x60] sm:$0xff] %vm441_vm5, %v437_v41 }
 0x1bf   : > { %v438_v43 = vpop.trf.xlu0 }
 0x1c0   : > { %455 = vst.msk [vmem:[%s721_s28 + $0x68] sm:$0xff] %vm441_vm5, %v438_v43 }
 0x1c3   : > { %v439_v52 = vpop.trf.xlu0 }
 0x1c4   : > { %456 = vst.msk [vmem:[%s721_s28 + $0x70] sm:$0xff] %vm441_vm5, %v439_v52 }
 0x1c7   : > { %v440_v53 = vpop.trf.xlu0 }
 0x1c8   : > { %457 = vst.msk [vmem:[%s721_s28 + $0x78] sm:$0xff] %vm441_vm5, %v440_v53 }
 0x1c9 PF: > { %s12_s9 = sadd.s32 1, %s575_s9  }
 0x1ca   : > { %p9_p5 = scmp.ge.s32.totalorder %s12_s9, 5  }
 0x1cc   :  { %11 = sbr.rel (!%p9_p5) target bundleno = 1 (0x1), region = 58 }

// kernel: tpu_custom_call.1
= control target key start
LH: loop header
LB: loop body
LE: loop exit
PB: predicated region body
PF: predicated region fallthrough
CT: control target
= control target key end

     0   :  { %7 = vsyncpa [#allocation3], 0  ;;  %s920_s0 = inlined_call_operand.vmem [shape: f32[4,384], index: 0, kind: input, shape index: {}]   ;;  %s921_s1 = inlined_call_operand.vmem [shape: f32[32,4], index: 1, kind: input, shape index: {}]   ;;  %s922_s2 = inlined_call_operand.hbm [shape: f32[64,384], index: 2, kind: output, shape index: {}]  }
   0x1   :  { %9 = vsyncpa [#allocation3 + $0x1], 0  ;;  %s660_s9 = smov 0   ;;  %s662_s10 = smov 0  }
   0x2   :  { %s664_s11 = smov 0   ;;  %s666_s12 = smov 0  }
   0x3 LB: > { %s681_s13 = sadd.s32 4294967295, %s639_s12   ;;  %s489_s14 = sadd.s32 4294967294, %s639_s12   ;;  %s639_s12 = sphi %s666_s12, %s932_s12   ;;  %s635_s11 = sphi %s664_s11, %s931_s11   ;;  %s631_s10 = sphi %s662_s10, %s930_s10   ;;  %s627_s9 = sphi %s660_s9, %s929_s9  }
   0x4   : > { %s685_s15 = sadd.s32 1, %s639_s12   ;;  %s69_s16 = sadd.s32 1, %s635_s11 }
   0x5   : > { %s66_s17 = ssub.s32 %s639_s12, %s685_s15  ;;  %p79_p0 = scmp.ne.s32.totalorder %s635_s11, %s631_s10 }
   0x6   : > { %p67_p1 = scmp.eq.s32.totalorder %s66_s17, 0  ;;  %p80_p2 = scmp.eq.s32.totalorder %s681_s13, 2 }
   0x7   : > { %p85_p3 = scmp.ne.s32.totalorder %s631_s10, %s627_s9  ;;  %p86_p4 = scmp.eq.s32.totalorder %s489_s14, 2 }
   0x8   : > { %s696_s18 = scalar_select %p67_p1, %s635_s11, %s69_s16  }
   0x9   : > { %p698_p5 = por %p80_p2, %p79_p0  ;;  %p702_p6 = por %p86_p4, %p85_p3 }
   0xa   : > { %p492_p7 = scmp.ge.s32.totalorder %s639_s12, 1  ;;  %p114_p8 = scmp.lt.s32.totalorder %s639_s12, 4 }
   0xc   : > { %p115_p9 = pnand %p492_p7, %p114_p8 }
   0xd   : > { %p135_p10 = scmp.lt.s32.totalorder (!%p115_p9), %s681_s13, 2  ;;  %v140_v0 = vld [vmem:[%s921_s1] sm:$0xff] (!%p115_p9)  ;;  %vm144_vm0 = vcmask (!%p115_p9), 31744   ;;  %v142_v1 = vld [vmem:[%s921_s1 + $0x10] sm:$0xff] (!%p115_p9)  ;;  %vm157_vm1 = vcmask (!%p115_p9), 1043456   ;;  %v141_v3 = vld [vmem:[%s921_s1 + $0x8] sm:$0xff] (!%p115_p9) }
   0xe   : > { %118 = sbr.rel (%p115_p9) target bundleno = 301 (0x12d), region = 28  ;;  %511 = vmatprep.mubr.msk.f32.mxu0 (!%p115_p9), %vm144_vm0, %v140_v0  ;;  %514 = vmatprep.mubr.msk.f32.mxu1 (!%p115_p9), %vm144_vm0, %v142_v1  ;;  %v143_v4 = vld [vmem:[%s921_s1 + $0x18] sm:$0xff] (!%p115_p9)  ;;  %s132_s6 = sand.u32 (!%p115_p9), 1, %s631_s10  }
   0xf   : > { %s493_s7 = sshll.u32 (!%p115_p9), %s132_s6, 6  ;;  %s501_s14 = sshll.u32 (!%p115_p9), %s681_s13, 7 }
  0x10   : > { %s839_s8 = scalar_lea.vmem (!%p115_p9), [#allocation2], %s493_s7  ;;  %s870_s22 = scalar_lea.hbm (!%p115_p9), %s922_s2, %s501_s14 }
  0x11   : > { %s427_s16 = sshll.u32 (!%p115_p9), %s839_s8, 4  ;;  %s641_s24 = smov (!%p115_p9), [#allocation2]   ;;  %s872_s16 = int_to_ptr.vmem [resolvable:$true] %s427_s16 }
  0x12   : > { %s577_s23 = scalar_lea.vmem (!%p115_p9), %s872_s16, 1024 }
  0x13   : > { %p578_p11 = scmp.ne.s32.totalorder (!%p115_p9), %s872_s16, %s577_s23 }
  0x15   : > { %s136_s25 = scalar_select %p135_p10, %s681_s13, 2 }
  0x16   : > { %s879_s13 = scalar_lea.sflag [#allocation3], %s132_s6  ;;  %p579_p12 = pnand %p578_p11, %p698_p5 }
  0x17   : > { %s494_s26 = sshll.u32 %s136_s25, 2  ;;  %s581_s25 = sshll.u32 %s641_s24, 4  ;;  %s582_s25 = int_to_ptr.vmem [resolvable:$false] %s581_s25 }
  0x18   : > { %s138_s29 = scalar_lea.vmem %s920_s0, %s494_s26  ;;  %p580_p13 = pneg %p579_p12 }
  0x19   : > { %v139_v2 = vld [vmem:[%s138_s29] sm:$0xf]  ;;  %s583_s26 = scalar_lea.vmem %s582_s25, 2048  ;;  %p584_p0 = scmp.lt.s32.totalorder %s872_s16, %s582_s25 }
  0x1a   : > { %509 = vmatprep.subr.msk.mxu0 %vm157_vm1, %v139_v2  ;;  %517 = vmatprep.subr.msk.mxu1 %vm157_vm1, %v139_v2  ;;  %p585_p1 = scmp.lt.s32.totalorder %s583_s26, %s577_s23 }
  0x1b   : > { %510 = vmatpush3.msk.msra.mxu0 %vm157_vm1, %v139_v2  ;;  %518 = vmatpush3.msk.msra.mxu1 %vm157_vm1, %v139_v2 }
  0x1c   : > { %512 = vmatmul.mubr.msk.f32.vlgmr.msra.gmra.mrb[0].mxu0 %vm144_vm0, %v141_v3  ;;  %515 = vmatmul.mubr.msk.f32.vlgmr.msra.gmra.mrb[0].mxu1 %vm144_vm0, %v143_v4  ;;  %p586_p2 = por %p585_p1, %p584_p0 }
  0x1e   : > { %p587_p3 = pnand %p586_p2, %p580_p13 }
  0xef   : > { %v513_v5 = vpop.f32.mrb[0].mxu0  ;;  %v516_v6 = vpop.f32.mrb[0].mxu1 }
  0xf0   : > { %v247_v7 = vmul.f32 0.63661975, %v513_v5  ;;  %v249_v8 = vmul.f32 0.63661975, %v516_v6  ;;  %v227_v9 = vpop.f32.mrb[1].mxu0  ;;  %v237_v10 = vpop.f32.mrb[1].mxu1 }
  0xf1   : > { %v246_v11 = vmul.f32 0.63661975, %v227_v9  ;;  %v729_v14 = vmul.f32 0.63661975, %v237_v10 }
  0xf2   : > { %v520_v12 = vround.rtne.f32 %v247_v7  ;;  %v522_v13 = vround.rtne.f32 %v249_v8  ;;  %v528_v21 = vcvt.f32.s32 %v247_v7  ;;  %v534_v26 = vcvt.f32.s32 %v249_v8 }
  0xf3   : > { %v519_v17 = vround.rtne.f32 %v246_v11  ;;  %v521_v20 = vround.rtne.f32 %v729_v14  ;;  %v525_v30 = vcvt.f32.s32 %v246_v11  ;;  %v531_v47 = vcvt.f32.s32 %v729_v14 }
  0xf4   : > { %v255_v15 = vmul.f32 1.5708008, %v520_v12  ;;  %v257_v16 = vmul.f32 1.5708008, %v522_v13  ;;  %v263_v19 = vmul.f32 -4.454516e-06, %v520_v12  ;;  %v265_v23 = vmul.f32 -4.454516e-06, %v522_v13 }
  0xf5   : > { %v271_v25 = vmul.f32 6.0770944e-11, %v520_v12  ;;  %v273_v28 = vmul.f32 6.0770944e-11, %v522_v13  ;;  %v254_v29 = vmul.f32 1.5708008, %v519_v17  ;;  %v256_v32 = vmul.f32 1.5708008, %v521_v20 }
  0xf6   : > { %v259_v18 = vsub.f32 %v513_v5, %v255_v15  ;;  %v261_v22 = vsub.f32 %v516_v6, %v257_v16  ;;  %v734_v33 = vand.u32 3, %v528_v21  ;;  %v262_v36 = vmul.f32 -4.454516e-06, %v519_v17 }
  0xf7   : > { %v258_v35 = vsub.f32 %v227_v9, %v254_v29  ;;  %v742_v38 = vand.u32 3, %v534_v26  ;;  %v270_v39 = vmul.f32 6.0770944e-11, %v519_v17  ;;  %v748_v42 = vand.u32 3, %v525_v30 }
  0xf8   : > { %v267_v24 = vsub.f32 %v259_v18, %v263_v19  ;;  %v269_v27 = vsub.f32 %v261_v22, %v265_v23  ;;  %v260_v43 = vsub.f32 %v237_v10, %v256_v32  ;;  %v264_v46 = vmul.f32 -4.454516e-06, %v521_v20 }
  0xf9   : > { %v266_v41 = vsub.f32 %v258_v35, %v262_v36  ;;  %v359_v48 = vand.u32 1, %v734_v33  ;;  %v272_v55 = vmul.f32 6.0770944e-11, %v521_v20  ;;  %v361_v58 = vand.u32 1, %v742_v38 }
  0xfa   : > { %v732_v31 = vsub.f32 %v267_v24, %v271_v25  ;;  %v736_v34 = vsub.f32 %v269_v27, %v273_v28  ;;  %v268_v54 = vsub.f32 %v260_v43, %v264_v46  ;;  %v358_v62 = vand.u32 1, %v748_v42 }
  0xfb   : > { %v756_v51 = vsub.f32 %v266_v41, %v270_v39  ;;  %vm778_vm2 = vcmp.eq.s32.totalorder %v359_v48, 1  ;;  %vm387_vm3 = vcmp.eq.s32.totalorder %v734_v33, 1  ;;  %vm391_vm4 = vcmp.eq.s32.totalorder %v734_v33, 2 }
  0xfc   : > { %v740_v37 = vmul.f32 %v732_v31, %v732_v31  ;;  %v746_v40 = vmul.f32 %v736_v34, %v736_v34  ;;  %v766_v63 = vsub.f32 %v268_v54, %v272_v55  ;;  %vm788_vm5 = vcmp.eq.s32.totalorder %v361_v58, 1  ;;  %vm395_vm12 = vmor %vm387_vm3, %vm391_vm4 }
  0xfd   : > { %v761_v59 = vmul.f32 %v756_v51, %v756_v51  ;;  %vm389_vm6 = vcmp.eq.s32.totalorder %v742_v38, 1  ;;  %vm393_vm7 = vcmp.eq.s32.totalorder %v742_v38, 2  ;;  %v794_v17 = vand.u32 3, %v531_v47 }
  0xfe   : > { %v295_v44 = vmul.f32 2.7557314e-06, %v740_v37  ;;  %v327_v45 = vmul.f32 2.4801588e-05, %v740_v37  ;;  %v297_v49 = vmul.f32 2.7557314e-06, %v746_v40  ;;  %v291_v0 = vmul.f32 %v740_v37, %v732_v31  ;;  %vm397_vm13 = vmor %vm389_vm6, %vm393_vm7 }
  0xff   : > { %v329_v50 = vmul.f32 2.4801588e-05, %v746_v40  ;;  %v294_v3 = vmul.f32 2.7557314e-06, %v761_v59  ;;  %v326_v6 = vmul.f32 2.4801588e-05, %v761_v59  ;;  %v776_v7 = vmul.f32 %v766_v63, %v766_v63 }
 0x100   : > { %v299_v52 = vadd.f32 -0.0001984127, %v295_v44  ;;  %v331_v53 = vadd.f32 -0.0013888889, %v327_v45  ;;  %v301_v56 = vadd.f32 -0.0001984127, %v297_v49  ;;  %v293_v9 = vmul.f32 %v746_v40, %v736_v34 }
 0x101   : > { %v333_v57 = vadd.f32 -0.0013888889, %v329_v50  ;;  %v298_v12 = vadd.f32 -0.0001984127, %v294_v3  ;;  %v330_v16 = vadd.f32 -0.0013888889, %v326_v6  ;;  %v290_v28 = vmul.f32 %v761_v59, %v756_v51 }
 0x102   : > { %v303_v60 = vmul.f32 %v299_v52, %v740_v37  ;;  %v335_v61 = vmul.f32 %v331_v53, %v740_v37  ;;  %v305_v1 = vmul.f32 %v301_v56, %v746_v40  ;;  %v296_v21 = vmul.f32 2.7557314e-06, %v776_v7 }
 0x103   : > { %v337_v2 = vmul.f32 %v333_v57, %v746_v40  ;;  %v302_v20 = vmul.f32 %v298_v12, %v761_v59  ;;  %vm375_vm8 = vcmp.ge.s32.totalorder %v734_v33, 2  ;;  %v334_v24 = vmul.f32 %v330_v16, %v761_v59 }
 0x104   : > { %v307_v4 = vadd.f32 0.008333334, %v303_v60  ;;  %v339_v5 = vadd.f32 0.041666668, %v335_v61  ;;  %v309_v10 = vadd.f32 0.008333334, %v305_v1  ;;  %v292_v8 = vmul.f32 %v776_v7, %v766_v63 }
 0x105   : > { %v341_v11 = vadd.f32 0.041666668, %v337_v2  ;;  %v328_v25 = vmul.f32 2.4801588e-05, %v776_v7  ;;  %vm377_vm9 = vcmp.ge.s32.totalorder %v742_v38, 2  ;;  %vm386_vm10 = vcmp.eq.s32.totalorder %v748_v42, 1 }
 0x106   : > { %v311_v13 = vmul.f32 %v307_v4, %v740_v37  ;;  %v343_v14 = vmul.f32 %v339_v5, %v740_v37  ;;  %v313_v18 = vmul.f32 %v309_v10, %v746_v40  ;;  %v306_v29 = vadd.f32 0.008333334, %v302_v20 }
 0x107   : > { %v345_v19 = vmul.f32 %v341_v11, %v746_v40  ;;  %v338_v35 = vadd.f32 0.041666668, %v334_v24  ;;  %v300_v36 = vadd.f32 -0.0001984127, %v296_v21  ;;  %vm390_vm11 = vcmp.eq.s32.totalorder %v748_v42, 2 }
 0x108   : > { %v315_v22 = vadd.f32 -0.16666667, %v311_v13  ;;  %v347_v23 = vadd.f32 -0.5, %v343_v14  ;;  %v317_v26 = vadd.f32 -0.16666667, %v313_v18  ;;  %v310_v43 = vmul.f32 %v306_v29, %v761_v59  ;;  %vm394_vm0 = vmor %vm386_vm10, %vm390_vm11 }
 0x109   : > { %v349_v27 = vadd.f32 -0.5, %v345_v19  ;;  %v332_v44 = vadd.f32 -0.0013888889, %v328_v25  ;;  %v342_v47 = vmul.f32 %v338_v35, %v761_v59  ;;  %vm362_vm14 = vcmp.eq.s32.totalorder %v358_v62, 1 }
 0x10a   : > { %v319_v30 = vmul.f32 %v315_v22, %v291_v0  ;;  %v351_v32 = vmul.f32 %v347_v23, %v740_v37  ;;  %v321_v39 = vmul.f32 %v317_v26, %v293_v9  ;;  %v304_v37 = vmul.f32 %v300_v36, %v776_v7 }
 0x10b   : > { %v353_v41 = vmul.f32 %v349_v27, %v746_v40  ;;  %v314_v40 = vadd.f32 -0.16666667, %v310_v43  ;;  %v336_v50 = vmul.f32 %v332_v44, %v776_v7  ;;  %v346_v54 = vadd.f32 -0.5, %v342_v47 }
 0x10c   : > { %v323_v45 = vadd.f32 %v319_v30, %v732_v31  ;;  %v355_v46 = vadd.f32 1.0, %v351_v32  ;;  %v325_v48 = vadd.f32 %v321_v39, %v736_v34  ;;  %v308_v55 = vadd.f32 0.008333334, %v304_v37 }
 0x10d   : > { %v357_v49 = vadd.f32 1.0, %v353_v41  ;;  %v318_v61 = vmul.f32 %v314_v40, %v290_v28  ;;  %v350_v0 = vmul.f32 %v346_v54, %v761_v59  ;;  %v340_v4 = vadd.f32 0.041666668, %v336_v50 }
 0x10e   : > { %v367_v52 = vsel %vm778_vm2, %v355_v46, %v323_v45  ;;  %v371_v53 = vsel %vm778_vm2, %v323_v45, %v355_v46  ;;  %v312_v3 = vmul.f32 %v308_v55, %v776_v7  ;;  %vm374_vm15 = vcmp.ge.s32.totalorder %v748_v42, 2 }
 0x10f   : > { %v379_v31 = vsub.f32 0.0, %v367_v52  ;;  %v399_v56 = vsub.f32 0.0, %v371_v53  ;;  %v369_v57 = vsel %vm788_vm5, %v357_v49, %v325_v48  ;;  %v373_v34 = vsel %vm788_vm5, %v325_v48, %v357_v49 }
 0x110   : > { %v381_v58 = vsub.f32 0.0, %v369_v57  ;;  %v401_v60 = vsub.f32 0.0, %v373_v34  ;;  %v322_v5 = vadd.f32 %v318_v61, %v756_v51  ;;  %v354_v6 = vadd.f32 1.0, %v350_v0 }
 0x111   : > { %v383_v1 = vsel %vm375_vm8, %v379_v31, %v367_v52  ;;  %v403_v2 = vsel %vm395_vm12, %v399_v56, %v371_v53  ;;  %v316_v9 = vadd.f32 -0.16666667, %v312_v3  ;;  %v344_v10 = vmul.f32 %v340_v4, %v776_v7 }
 0x112   : > { %407 = vst [vmem:[%s839_s8 + $0x8] sm:$0xff] %v383_v1  ;;  %411 = vst [vmem:[%s839_s8 + $0x28] sm:$0xff] %v403_v2  ;;  %v385_v33 = vsel %vm377_vm9, %v381_v58, %v369_v57  ;;  %v405_v59 = vsel %vm397_vm13, %v401_v60, %v373_v34  ;;  %v366_v38 = vsel %vm362_vm14, %v354_v6, %v322_v5  ;;  %v360_v62 = vand.u32 1, %v794_v17 }
 0x113   : > { %409 = vst [vmem:[%s839_s8 + $0x18] sm:$0xff] %v385_v33  ;;  %413 = vst [vmem:[%s839_s8 + $0x38] sm:$0xff] %v405_v59  ;;  %v370_v11 = vsel %vm362_vm14, %v322_v5, %v354_v6  ;;  %v378_v12 = vsub.f32 0.0, %v366_v38  ;;  %v320_v13 = vmul.f32 %v316_v9, %v292_v8  ;;  %v348_v14 = vadd.f32 -0.5, %v344_v10 }
 0x114   : > { %v398_v51 = vsub.f32 0.0, %v370_v11  ;;  %vm364_vm1 = vcmp.eq.s32.totalorder %v360_v62, 1  ;;  %vm388_vm2 = vcmp.eq.s32.totalorder %v794_v17, 1  ;;  %vm392_vm3 = vcmp.eq.s32.totalorder %v794_v17, 2 }
 0x115   : > { %v382_v15 = vsel %vm374_vm15, %v378_v12, %v366_v38  ;;  %v324_v18 = vadd.f32 %v320_v13, %v766_v63  ;;  %v352_v19 = vmul.f32 %v348_v14, %v776_v7  ;;  %vm376_vm4 = vcmp.ge.s32.totalorder %v794_v17, 2  ;;  %vm396_vm5 = vmor %vm388_vm2, %vm392_vm3 }
 0x116   : > { %v402_v16 = vsel %vm394_vm0, %v398_v51, %v370_v11  ;;  %406 = vst [vmem:[%s839_s8] sm:$0xff] %v382_v15 }
 0x117   : > { %410 = vst [vmem:[%s839_s8 + $0x20] sm:$0xff] %v402_v16  ;;  %v356_v20 = vadd.f32 1.0, %v352_v19 }
 0x119   : > { %v368_v42 = vsel %vm364_vm1, %v356_v20, %v324_v18  ;;  %v372_v21 = vsel %vm364_vm1, %v324_v18, %v356_v20 }
 0x11a   : > { %v380_v63 = vsub.f32 0.0, %v368_v42  ;;  %v400_v7 = vsub.f32 0.0, %v372_v21 }
 0x11c   : > { %v384_v22 = vsel %vm376_vm4, %v380_v63, %v368_v42  ;;  %v404_v23 = vsel %vm396_vm5, %v400_v7, %v372_v21 }
 0x11d   : > { %408 = vst [vmem:[%s839_s8 + $0x10] sm:$0xff] %v384_v22  ;;  %412 = vst [vmem:[%s839_s8 + $0x30] sm:$0xff] %v404_v23 }
 0x11e   : > { %590 = shalt.err (!%p587_p3)
}
 0x11f   : > { %s591_s27 = scalar_lea.hbm %s870_s22, 1024  ;;  %s595_s30 = scalar_lea.hbm %s922_s2, 3072 }
 0x120   : > { %p592_p4 = scmp.ne.s32.totalorder %s870_s22, %s591_s27  ;;  %p596_p9 = scmp.lt.u32.totalorder %s870_s22, %s922_s2 }
 0x121   : > { %p597_p10 = scmp.lt.u32.totalorder %s595_s30, %s591_s27  ;;  %p599_p12 = scmp.lt.u32.totalorder %s591_s27, %s870_s22 }
 0x122   : > { %p593_p7 = pnand %p592_p4, %p698_p5 }
 0x123   : > { %p598_p11 = por %p597_p10, %p596_p9 }
 0x124   : > { %p594_p8 = pneg %p593_p7 }
 0x125   : > { %p600_p13 = por %p599_p12, %p598_p11 }
 0x127   : > { %p601_p0 = pnand %p600_p13, %p594_p8 }
 0x129   : > { %604 = shalt.err (!%p601_p0)
}
 0x12a   : > { %s642_s5 = smov 128   ;;  %s643_s6 = smov 384  }
 0x12b   : > { %s644_s7 = smov 8  }
 0x12c   : > { %535 = dma.vmem_to_hbm [thread:$0]  (%p698_p5), %s872_s16, 1024, %s870_s22, %s879_s13, %s642_s5, %s643_s6, %s644_s7  }
 0x12d PF: > { %p541_p1 = scmp.ge.s32.totalorder %s639_s12, 2  ;;  %s442_s8 = sand.u32 1, %s627_s9  }
 0x12e   : > { %s443_s14 = scalar_lea.sflag [#allocation3], %s442_s8 }
 0x12f   : > { %p538_p2 = pnand %p541_p1, %p702_p6 }
 0x131   : > { %622 = dma.done.wait (!%p538_p2), %s443_s14, 1024  }
 0x132   : > { %624 = vsyncadd (!%p538_p2), %s443_s14, 4294966272  ;;  %p12_p3 = scmp.ge.s32.totalorder %s685_s15, 5   ;;  %s929_s9 = smov %s631_s10 }
 0x133   : > { %s930_s10 = smov %s635_s11  ;;  %s931_s11 = smov %s696_s18 }
 0x134   : > { %s932_s12 = smov %s685_s15  ;;  %14 = sbr.rel (!%p12_p3) target bundleno = 3 (0x3), region = 63 }
 0x13b   :  { %448 = vsyncpa [#allocation3], 1 }
 0x13c   :  { %450 = vsyncpa [#allocation3 + $0x1], 1 }

</bundles_post_ra>
